<compile_context>
chip_gen: v6e
topology: v6e:2x2x1
jax: 0.10.0
libtpu: 0.0.40
codegen_flags: <defaults>
</compile_context>

<pallas_src>
import jax
import jax.numpy as jnp
from jax.experimental import pallas as pl
from jax.experimental.pallas import tpu as pltpu

INPUT_DIM = 16      # d_model (divisible by nhead=8)
HIDDEN_DIM = 32     # dim_feedforward
NUM_CLASSES = 4
NUM_LAYERS = 2
LR = 0.1
LN_EPS = 1e-5


def _round_up(n, m):
    return ((n + m - 1) // m) * m


def _layer_norm_tokens(x, gamma, beta):
    """Token-major (N, D) layernorm over the last axis (pure-JAX reference)."""
    mu = jnp.mean(x, axis=-1, keepdims=True)
    var = jnp.mean((x - mu) ** 2, axis=-1, keepdims=True)
    return (x - mu) * jax.lax.rsqrt(var + LN_EPS) * gamma + beta


def _layer_norm_features(x, gamma, beta):
    """Feature-major (D, T) layernorm over axis 0 (features on sublanes)."""
    mu = jnp.mean(x, axis=0, keepdims=True)
    var = jnp.mean((x - mu) ** 2, axis=0, keepdims=True)
    return (x - mu) * jax.lax.rsqrt(var + LN_EPS) * gamma + beta


def transgboost_kernel(x_ref, wa_ref, ba_ref, w1_ref, b1_ref, w2_ref,
                       vec_ref, wout_ref, bout_ref, out_ref):
    D, L = INPUT_DIM, NUM_LAYERS

    # (tile, D) token-major block -> (D, tile) feature-major. One small XLU
    # transpose in-kernel replaces the former host-side pad+transpose HBM pass.
    x = jnp.transpose(x_ref[...])                              # (D, T)

    # Both layers' fused attention (Wv.Wo) reads the ORIGINAL x -> one stacked
    # matmul. The residual identity is folded into wa per layer block, so rows
    # [l*D:(l+1)*D] of pre_all are already x + attn_l.
    pre_all = jnp.dot(wa_ref[...], x,
                      preferred_element_type=jnp.float32) + ba_ref[...]  # (L*D, T)

    head = None
    for l in range(L):                                         # static unroll, L=2
        pre = pre_all[l * D:(l + 1) * D, :]                    # (D, T)
        g1 = vec_ref[0 * L + l]                                # (D, 1)
        be1 = vec_ref[1 * L + l]
        b2 = vec_ref[2 * L + l]
        g2 = vec_ref[3 * L + l]
        be2 = vec_ref[4 * L + l]

        h = _layer_norm_features(pre, g1, be1)                 # (D, T)
        ff = jnp.maximum(
            jnp.dot(w1_ref[l], h, preferred_element_type=jnp.float32)
            + b1_ref[l], 0.0)                                  # (H, T)
        ff = jnp.dot(w2_ref[l], ff, preferred_element_type=jnp.float32) + b2
        y = _layer_norm_features(h + ff, g2, be2)              # (D, T)

        # Class head (LR folded into the weights); accumulate per layer so no
        # (L*D, T) concat copy is ever materialized in VMEM.
        contrib = jnp.dot(wout_ref[l], y, preferred_element_type=jnp.float32)
        head = contrib if head is None else head + contrib     # (C, T)

    out_ref[...] = head + bout_ref[...]                        # lane-dense store


def _pack_kernel_params(p):
    """Fuse/transpose the PyTorch-style params into the kernel's layout."""
    L, D, H, C = NUM_LAYERS, INPUT_DIM, HIDDEN_DIM, NUM_CLASSES

    def col(v):  # (L, 1, K) -> (L, K, 1)
        return jnp.transpose(v, (0, 2, 1))

    # Length-1 sequence => softmax == 1: attn = x @ (Wv Wo) + (bv Wo + bo).
    w_attn = jnp.einsum('lij,ljk->lik', p["wv"], p["wo"])            # (L, D, D)
    b_attn = jnp.einsum('lij,ljk->lik', p["bv"], p["wo"]) + p["bo"]  # (L, 1, D)

    # Feature-major weights; fold the first residual (+x) into the matmul.
    eye = jnp.eye(D, dtype=jnp.float32)
    wa = (jnp.transpose(w_attn, (0, 2, 1)) + eye).reshape(L * D, D)  # (L*D, D)
    ba = b_attn.reshape(L * D, 1)                                    # (L*D, 1)

    w1 = jnp.transpose(p["w1"], (0, 2, 1))                           # (L, H, D)
    b1 = col(p["b1"])                                                # (L, H, 1)
    w2 = jnp.transpose(p["w2"], (0, 2, 1))                           # (L, D, H)

    # All per-layer D-sized vectors in one buffer, indexed k*L + l in-kernel.
    vecs = jnp.concatenate(
        [col(p["g1"]), col(p["be1"]), col(p["b2"]),
         col(p["g2"]), col(p["be2"])], axis=0)                       # (5L, D, 1)

    # Class heads with the boosting LR folded in; biases pre-summed over layers.
    wout = LR * jnp.transpose(p["wout"], (0, 2, 1))                  # (L, C, D)
    bout = LR * jnp.sum(p["bout"], axis=0).T                         # (C, 1)
    return wa, ba, w1, b1, w2, vecs, wout, bout


def transgboost_forward(x, params, *, token_tile=8192, feature_major_out=False):
    """TransGBoost forward.

    token_tile: tokens per grid step (rounded to a multiple of 128). 8192 is a
      safe default on v5e/v6e/v7x (~4 MiB live per tile); sweep upward on
      v6e/v5e, keep <= ~16K on v7x (64 MiB physical VMEM, 2 TCs to feed).
    feature_major_out: return the kernel's native lane-dense (C, B*S) layout
      and skip the post-kernel transpose (use if downstream permits).
    """
    B, S, D = x.shape
    assert D == INPUT_DIM
    C = NUM_CLASSES
    N = B * S

    # Tokens live on lanes: the tile must be a multiple of 128. Cap it at
    # ceil(N/2) so the parallel grid has >= 2 steps when possible (v7x 2 TCs).
    tile = _round_up(max(1, min(token_tile, -(-N // 2))), 128)
    n_pad = _round_up(N, tile)

    x2 = x.reshape(N, D).astype(jnp.float32)                  # free view
    # No-op when N is tile-aligned (XLA elides zero-width pads); otherwise one
    # copy of x that keeps every block fully in bounds. No transpose here.
    x_in = jnp.pad(x2, ((0, n_pad - N), (0, 0)))              # (n_pad, D)

    weights = _pack_kernel_params(params)

    def const_spec(a):
        nd = a.ndim
        return pl.BlockSpec(a.shape, lambda i, _nd=nd: (0,) * _nd)

    in_specs = [pl.BlockSpec((tile, D), lambda i: (i, 0))]
    in_specs += [const_spec(w) for w in weights]

    out = pl.pallas_call(
        transgboost_kernel,
        grid=(n_pad // tile,),
        in_specs=in_specs,
        out_specs=pl.BlockSpec((C, tile), lambda i: (0, i)),
        out_shape=jax.ShapeDtypeStruct((C, n_pad), jnp.float32),
        compiler_params=pltpu.CompilerParams(
            dimension_semantics=("parallel",),
            # Headroom for large token_tile sweeps (v5e's scoped default is
            # only 16 MiB); well under every generation's physical VMEM.
            vmem_limit_bytes=32 * 1024 * 1024,
        ),
    )(x_in, *weights)

    if feature_major_out:
        return out[:, :N]                                     # (C, N), lane-dense
    return out[:, :N].T.reshape(B, S, C)


def init_params(key):
    L, D, H, C = NUM_LAYERS, INPUT_DIM, HIDDEN_DIM, NUM_CLASSES
    keys = jax.random.split(key, 10)

    def rnd(k, shape, scale=0.1):
        return scale * jax.random.normal(k, shape, dtype=jnp.float32)

    return {
        "wv":   rnd(keys[0], (L, D, D)),
        "bv":   rnd(keys[1], (L, 1, D)),
        "wo":   rnd(keys[2], (L, D, D)),
        "bo":   rnd(keys[3], (L, 1, D)),
        "g1":   jnp.ones((L, 1, D), jnp.float32),
        "be1":  jnp.zeros((L, 1, D), jnp.float32),
        "w1":   rnd(keys[4], (L, D, H)),
        "b1":   rnd(keys[5], (L, 1, H)),
        "w2":   rnd(keys[6], (L, H, D)),
        "b2":   rnd(keys[7], (L, 1, D)),
        "g2":   jnp.ones((L, 1, D), jnp.float32),
        "be2":  jnp.zeros((L, 1, D), jnp.float32),
        "wout": rnd(keys[8], (L, D, C)),
        "bout": rnd(keys[9], (L, 1, C)),
    }


def reference_forward(x, p):
    """Pure-JAX reference mirroring the PyTorch math (unfused)."""
    B, S, D = x.shape
    xt = x.reshape(B * S, D)
    acc = jnp.zeros((B * S, NUM_CLASSES), jnp.float32)
    for l in range(NUM_LAYERS):
        v = xt @ p["wv"][l] + p["bv"][l]
        attn = v @ p["wo"][l] + p["bo"][l]
        h = _layer_norm_tokens(xt + attn, p["g1"][l], p["be1"][l])
        ff = jnp.maximum(h @ p["w1"][l] + p["b1"][l], 0.0) @ p["w2"][l] + p["b2"][l]
        y = _layer_norm_tokens(h + ff, p["g2"][l], p["be2"][l])
        acc = acc + y @ p["wout"][l] + p["bout"][l]
    return (acc * LR).reshape(B, S, NUM_CLASSES)


if __name__ == "__main__":
    key = jax.random.PRNGKey(0)
    kx, kp = jax.random.split(key)
    B, S = 2, 8
    x = jax.random.normal(kx, (B, S, INPUT_DIM), dtype=jnp.float32)
    params = init_params(kp)

    out = transgboost_forward(x, params)
    out = jax.block_until_ready(out)

    ref = reference_forward(x, params)
    assert out.shape == (B, S, NUM_CLASSES), out.shape
    max_err = float(jnp.max(jnp.abs(out - ref)))
    assert max_err < 1e-4, f"mismatch vs reference: {max_err}"
    print("KERNEL_OK")
</pallas_src>

<mosaic_0001>
module attributes {stable_mosaic.version = 11 : i64} {
  func.func @transgboost_kernel(%arg0: i32, %arg1: memref<128x16xf32, #tpu.memory_space<vmem>>, %arg2: memref<32x16xf32, #tpu.memory_space<vmem>>, %arg3: memref<32x1xf32, #tpu.memory_space<vmem>>, %arg4: memref<2x32x16xf32, #tpu.memory_space<vmem>>, %arg5: memref<2x32x1xf32, #tpu.memory_space<vmem>>, %arg6: memref<2x16x32xf32, #tpu.memory_space<vmem>>, %arg7: memref<10x16x1xf32, #tpu.memory_space<vmem>>, %arg8: memref<2x4x16xf32, #tpu.memory_space<vmem>>, %arg9: memref<4x1xf32, #tpu.memory_space<vmem>>, %arg10: memref<4x128xf32, #tpu.memory_space<vmem>>) attributes {dimension_semantics = [#tpu.dimension_semantics<parallel>], iteration_bounds = array<i64: 1>, scalar_prefetch = 0 : i64, scratch_operands = 0 : i64, tpu.core_type = #tpu.core_type<tc>, window_params = [{transform_indices = @transform_0, window_bounds = array<i64: 128, 16>}, {pipeline_mode = #tpu.pipeline_mode<synchronous>, transform_indices = @transform_1, window_bounds = array<i64: 32, 16>}, {pipeline_mode = #tpu.pipeline_mode<synchronous>, transform_indices = @transform_2, window_bounds = array<i64: 32, 1>}, {pipeline_mode = #tpu.pipeline_mode<synchronous>, transform_indices = @transform_3, window_bounds = array<i64: 2, 32, 16>}, {pipeline_mode = #tpu.pipeline_mode<synchronous>, transform_indices = @transform_4, window_bounds = array<i64: 2, 32, 1>}, {pipeline_mode = #tpu.pipeline_mode<synchronous>, transform_indices = @transform_5, window_bounds = array<i64: 2, 16, 32>}, {pipeline_mode = #tpu.pipeline_mode<synchronous>, transform_indices = @transform_6, window_bounds = array<i64: 10, 16, 1>}, {pipeline_mode = #tpu.pipeline_mode<synchronous>, transform_indices = @transform_7, window_bounds = array<i64: 2, 4, 16>}, {pipeline_mode = #tpu.pipeline_mode<synchronous>, transform_indices = @transform_8, window_bounds = array<i64: 4, 1>}, {transform_indices = @transform_9, window_bounds = array<i64: 4, 128>}]} {
    %c0 = arith.constant 0 : index
    %c0_0 = arith.constant 0 : index
    %0 = vector.load %arg1[%c0, %c0_0] : memref<128x16xf32, #tpu.memory_space<vmem>>, vector<128x16xf32>
    %1 = tpu.transpose %0, [1, 0] : vector<128x16xf32> -> vector<16x128xf32>
    %c0_1 = arith.constant 0 : index
    %c0_2 = arith.constant 0 : index
    %2 = vector.load %arg2[%c0_1, %c0_2] : memref<32x16xf32, #tpu.memory_space<vmem>>, vector<32x16xf32>
    %cst = arith.constant dense<0.000000e+00> : vector<32x128xf32>
    %3 = tpu.matmul %2, %1, %cst {dimension_numbers = #tpu.dot_dimension_numbers<[1], [0], [0], [1], [0, 0, 1, 1], [], []>} : vector<32x16xf32>, vector<16x128xf32>, vector<32x128xf32> -> vector<32x128xf32>
    %c0_3 = arith.constant 0 : index
    %c0_4 = arith.constant 0 : index
    %4 = vector.load %arg3[%c0_3, %c0_4] : memref<32x1xf32, #tpu.memory_space<vmem>>, vector<32x1xf32>
    %5 = vector.broadcast %4 : vector<32x1xf32> to vector<32x128xf32>
    %6 = arith.addf %3, %5 : vector<32x128xf32>
    %7 = vector.extract_strided_slice %6 {offsets = [0, 0], sizes = [16, 128], strides = [1, 1]} : vector<32x128xf32> to vector<16x128xf32>
    %c0_5 = arith.constant 0 : index
    %c0_6 = arith.constant 0 : index
    %c0_7 = arith.constant 0 : index
    %8 = vector.load %arg7[%c0_5, %c0_6, %c0_7] : memref<10x16x1xf32, #tpu.memory_space<vmem>>, vector<1x16x1xf32>
    %9 = vector.shape_cast %8 : vector<1x16x1xf32> to vector<16x1xf32>
    %c2 = arith.constant 2 : index
    %c0_8 = arith.constant 0 : index
    %c0_9 = arith.constant 0 : index
    %10 = vector.load %arg7[%c2, %c0_8, %c0_9] : memref<10x16x1xf32, #tpu.memory_space<vmem>>, vector<1x16x1xf32>
    %11 = vector.shape_cast %10 : vector<1x16x1xf32> to vector<16x1xf32>
    %c4 = arith.constant 4 : index
    %c0_10 = arith.constant 0 : index
    %c0_11 = arith.constant 0 : index
    %12 = vector.load %arg7[%c4, %c0_10, %c0_11] : memref<10x16x1xf32, #tpu.memory_space<vmem>>, vector<1x16x1xf32>
    %13 = vector.shape_cast %12 : vector<1x16x1xf32> to vector<16x1xf32>
    %c6 = arith.constant 6 : index
    %c0_12 = arith.constant 0 : index
    %c0_13 = arith.constant 0 : index
    %14 = vector.load %arg7[%c6, %c0_12, %c0_13] : memref<10x16x1xf32, #tpu.memory_space<vmem>>, vector<1x16x1xf32>
    %15 = vector.shape_cast %14 : vector<1x16x1xf32> to vector<16x1xf32>
    %c8 = arith.constant 8 : index
    %c0_14 = arith.constant 0 : index
    %c0_15 = arith.constant 0 : index
    %16 = vector.load %arg7[%c8, %c0_14, %c0_15] : memref<10x16x1xf32, #tpu.memory_space<vmem>>, vector<1x16x1xf32>
    %17 = vector.shape_cast %16 : vector<1x16x1xf32> to vector<16x1xf32>
    %cst_16 = arith.constant dense<0.000000e+00> : vector<128xf32>
    %18 = vector.multi_reduction <add>, %7, %cst_16 [0] : vector<16x128xf32> to vector<128xf32>
    %19 = vector.shape_cast %18 : vector<128xf32> to vector<1x128xf32>
    %cst_17 = arith.constant 1.600000e+01 : f32
    %20 = vector.broadcast %cst_17 : f32 to vector<1x128xf32>
    %21 = arith.divf %19, %20 : vector<1x128xf32>
    %22 = vector.broadcast %21 : vector<1x128xf32> to vector<16x128xf32>
    %23 = arith.subf %7, %22 : vector<16x128xf32>
    %24 = arith.mulf %23, %23 : vector<16x128xf32>
    %cst_18 = arith.constant dense<0.000000e+00> : vector<128xf32>
    %25 = vector.multi_reduction <add>, %24, %cst_18 [0] : vector<16x128xf32> to vector<128xf32>
    %26 = vector.shape_cast %25 : vector<128xf32> to vector<1x128xf32>
    %cst_19 = arith.constant 1.600000e+01 : f32
    %27 = vector.broadcast %cst_19 : f32 to vector<1x128xf32>
    %28 = arith.divf %26, %27 : vector<1x128xf32>
    %29 = vector.broadcast %21 : vector<1x128xf32> to vector<16x128xf32>
    %30 = arith.subf %7, %29 : vector<16x128xf32>
    %cst_20 = arith.constant 9.99999974E-6 : f32
    %31 = vector.broadcast %cst_20 : f32 to vector<1x128xf32>
    %32 = arith.addf %28, %31 : vector<1x128xf32>
    %33 = math.rsqrt %32 : vector<1x128xf32>
    %34 = vector.broadcast %33 : vector<1x128xf32> to vector<16x128xf32>
    %35 = arith.mulf %30, %34 : vector<16x128xf32>
    %36 = vector.broadcast %9 : vector<16x1xf32> to vector<16x128xf32>
    %37 = arith.mulf %35, %36 : vector<16x128xf32>
    %38 = vector.broadcast %11 : vector<16x1xf32> to vector<16x128xf32>
    %39 = arith.addf %37, %38 : vector<16x128xf32>
    %c0_21 = arith.constant 0 : index
    %c0_22 = arith.constant 0 : index
    %c0_23 = arith.constant 0 : index
    %40 = vector.load %arg4[%c0_21, %c0_22, %c0_23] : memref<2x32x16xf32, #tpu.memory_space<vmem>>, vector<1x32x16xf32>
    %41 = vector.shape_cast %40 : vector<1x32x16xf32> to vector<32x16xf32>
    %cst_24 = arith.constant dense<0.000000e+00> : vector<32x128xf32>
    %42 = tpu.matmul %41, %39, %cst_24 {dimension_numbers = #tpu.dot_dimension_numbers<[1], [0], [0], [1], [0, 0, 1, 1], [], []>} : vector<32x16xf32>, vector<16x128xf32>, vector<32x128xf32> -> vector<32x128xf32>
    %c0_25 = arith.constant 0 : index
    %c0_26 = arith.constant 0 : index
    %c0_27 = arith.constant 0 : index
    %43 = vector.load %arg5[%c0_25, %c0_26, %c0_27] : memref<2x32x1xf32, #tpu.memory_space<vmem>>, vector<1x32x1xf32>
    %44 = vector.shape_cast %43 : vector<1x32x1xf32> to vector<32x1xf32>
    %45 = vector.broadcast %44 : vector<32x1xf32> to vector<32x128xf32>
    %46 = arith.addf %42, %45 : vector<32x128xf32>
    %cst_28 = arith.constant 0.000000e+00 : f32
    %47 = vector.broadcast %cst_28 : f32 to vector<32x128xf32>
    %48 = arith.maximumf %46, %47 : vector<32x128xf32>
    %c0_29 = arith.constant 0 : index
    %c0_30 = arith.constant 0 : index
    %c0_31 = arith.constant 0 : index
    %49 = vector.load %arg6[%c0_29, %c0_30, %c0_31] : memref<2x16x32xf32, #tpu.memory_space<vmem>>, vector<1x16x32xf32>
    %50 = vector.shape_cast %49 : vector<1x16x32xf32> to vector<16x32xf32>
    %cst_32 = arith.constant dense<0.000000e+00> : vector<16x128xf32>
    %51 = tpu.matmul %50, %48, %cst_32 {dimension_numbers = #tpu.dot_dimension_numbers<[1], [0], [0], [1], [0, 0, 1, 1], [], []>} : vector<16x32xf32>, vector<32x128xf32>, vector<16x128xf32> -> vector<16x128xf32>
    %52 = vector.broadcast %13 : vector<16x1xf32> to vector<16x128xf32>
    %53 = arith.addf %51, %52 : vector<16x128xf32>
    %54 = arith.addf %39, %53 : vector<16x128xf32>
    %cst_33 = arith.constant dense<0.000000e+00> : vector<128xf32>
    %55 = vector.multi_reduction <add>, %54, %cst_33 [0] : vector<16x128xf32> to vector<128xf32>
    %56 = vector.shape_cast %55 : vector<128xf32> to vector<1x128xf32>
    %cst_34 = arith.constant 1.600000e+01 : f32
    %57 = vector.broadcast %cst_34 : f32 to vector<1x128xf32>
    %58 = arith.divf %56, %57 : vector<1x128xf32>
    %59 = vector.broadcast %58 : vector<1x128xf32> to vector<16x128xf32>
    %60 = arith.subf %54, %59 : vector<16x128xf32>
    %61 = arith.mulf %60, %60 : vector<16x128xf32>
    %cst_35 = arith.constant dense<0.000000e+00> : vector<128xf32>
    %62 = vector.multi_reduction <add>, %61, %cst_35 [0] : vector<16x128xf32> to vector<128xf32>
    %63 = vector.shape_cast %62 : vector<128xf32> to vector<1x128xf32>
    %cst_36 = arith.constant 1.600000e+01 : f32
    %64 = vector.broadcast %cst_36 : f32 to vector<1x128xf32>
    %65 = arith.divf %63, %64 : vector<1x128xf32>
    %66 = vector.broadcast %58 : vector<1x128xf32> to vector<16x128xf32>
    %67 = arith.subf %54, %66 : vector<16x128xf32>
    %cst_37 = arith.constant 9.99999974E-6 : f32
    %68 = vector.broadcast %cst_37 : f32 to vector<1x128xf32>
    %69 = arith.addf %65, %68 : vector<1x128xf32>
    %70 = math.rsqrt %69 : vector<1x128xf32>
    %71 = vector.broadcast %70 : vector<1x128xf32> to vector<16x128xf32>
    %72 = arith.mulf %67, %71 : vector<16x128xf32>
    %73 = vector.broadcast %15 : vector<16x1xf32> to vector<16x128xf32>
    %74 = arith.mulf %72, %73 : vector<16x128xf32>
    %75 = vector.broadcast %17 : vector<16x1xf32> to vector<16x128xf32>
    %76 = arith.addf %74, %75 : vector<16x128xf32>
    %c0_38 = arith.constant 0 : index
    %c0_39 = arith.constant 0 : index
    %c0_40 = arith.constant 0 : index
    %77 = vector.load %arg8[%c0_38, %c0_39, %c0_40] : memref<2x4x16xf32, #tpu.memory_space<vmem>>, vector<1x4x16xf32>
    %78 = vector.shape_cast %77 : vector<1x4x16xf32> to vector<4x16xf32>
    %cst_41 = arith.constant dense<0.000000e+00> : vector<4x128xf32>
    %79 = tpu.matmul %78, %76, %cst_41 {dimension_numbers = #tpu.dot_dimension_numbers<[1], [0], [0], [1], [0, 0, 1, 1], [], []>} : vector<4x16xf32>, vector<16x128xf32>, vector<4x128xf32> -> vector<4x128xf32>
    %80 = vector.extract_strided_slice %6 {offsets = [16, 0], sizes = [16, 128], strides = [1, 1]} : vector<32x128xf32> to vector<16x128xf32>
    %c1 = arith.constant 1 : index
    %c0_42 = arith.constant 0 : index
    %c0_43 = arith.constant 0 : index
    %81 = vector.load %arg7[%c1, %c0_42, %c0_43] : memref<10x16x1xf32, #tpu.memory_space<vmem>>, vector<1x16x1xf32>
    %82 = vector.shape_cast %81 : vector<1x16x1xf32> to vector<16x1xf32>
    %c3 = arith.constant 3 : index
    %c0_44 = arith.constant 0 : index
    %c0_45 = arith.constant 0 : index
    %83 = vector.load %arg7[%c3, %c0_44, %c0_45] : memref<10x16x1xf32, #tpu.memory_space<vmem>>, vector<1x16x1xf32>
    %84 = vector.shape_cast %83 : vector<1x16x1xf32> to vector<16x1xf32>
    %c5 = arith.constant 5 : index
    %c0_46 = arith.constant 0 : index
    %c0_47 = arith.constant 0 : index
    %85 = vector.load %arg7[%c5, %c0_46, %c0_47] : memref<10x16x1xf32, #tpu.memory_space<vmem>>, vector<1x16x1xf32>
    %86 = vector.shape_cast %85 : vector<1x16x1xf32> to vector<16x1xf32>
    %c7 = arith.constant 7 : index
    %c0_48 = arith.constant 0 : index
    %c0_49 = arith.constant 0 : index
    %87 = vector.load %arg7[%c7, %c0_48, %c0_49] : memref<10x16x1xf32, #tpu.memory_space<vmem>>, vector<1x16x1xf32>
    %88 = vector.shape_cast %87 : vector<1x16x1xf32> to vector<16x1xf32>
    %c9 = arith.constant 9 : index
    %c0_50 = arith.constant 0 : index
    %c0_51 = arith.constant 0 : index
    %89 = vector.load %arg7[%c9, %c0_50, %c0_51] : memref<10x16x1xf32, #tpu.memory_space<vmem>>, vector<1x16x1xf32>
    %90 = vector.shape_cast %89 : vector<1x16x1xf32> to vector<16x1xf32>
    %cst_52 = arith.constant dense<0.000000e+00> : vector<128xf32>
    %91 = vector.multi_reduction <add>, %80, %cst_52 [0] : vector<16x128xf32> to vector<128xf32>
    %92 = vector.shape_cast %91 : vector<128xf32> to vector<1x128xf32>
    %cst_53 = arith.constant 1.600000e+01 : f32
    %93 = vector.broadcast %cst_53 : f32 to vector<1x128xf32>
    %94 = arith.divf %92, %93 : vector<1x128xf32>
    %95 = vector.broadcast %94 : vector<1x128xf32> to vector<16x128xf32>
    %96 = arith.subf %80, %95 : vector<16x128xf32>
    %97 = arith.mulf %96, %96 : vector<16x128xf32>
    %cst_54 = arith.constant dense<0.000000e+00> : vector<128xf32>
    %98 = vector.multi_reduction <add>, %97, %cst_54 [0] : vector<16x128xf32> to vector<128xf32>
    %99 = vector.shape_cast %98 : vector<128xf32> to vector<1x128xf32>
    %cst_55 = arith.constant 1.600000e+01 : f32
    %100 = vector.broadcast %cst_55 : f32 to vector<1x128xf32>
    %101 = arith.divf %99, %100 : vector<1x128xf32>
    %102 = vector.broadcast %94 : vector<1x128xf32> to vector<16x128xf32>
    %103 = arith.subf %80, %102 : vector<16x128xf32>
    %cst_56 = arith.constant 9.99999974E-6 : f32
    %104 = vector.broadcast %cst_56 : f32 to vector<1x128xf32>
    %105 = arith.addf %101, %104 : vector<1x128xf32>
    %106 = math.rsqrt %105 : vector<1x128xf32>
    %107 = vector.broadcast %106 : vector<1x128xf32> to vector<16x128xf32>
    %108 = arith.mulf %103, %107 : vector<16x128xf32>
    %109 = vector.broadcast %82 : vector<16x1xf32> to vector<16x128xf32>
    %110 = arith.mulf %108, %109 : vector<16x128xf32>
    %111 = vector.broadcast %84 : vector<16x1xf32> to vector<16x128xf32>
    %112 = arith.addf %110, %111 : vector<16x128xf32>
    %c1_57 = arith.constant 1 : index
    %c0_58 = arith.constant 0 : index
    %c0_59 = arith.constant 0 : index
    %113 = vector.load %arg4[%c1_57, %c0_58, %c0_59] : memref<2x32x16xf32, #tpu.memory_space<vmem>>, vector<1x32x16xf32>
    %114 = vector.shape_cast %113 : vector<1x32x16xf32> to vector<32x16xf32>
    %cst_60 = arith.constant dense<0.000000e+00> : vector<32x128xf32>
    %115 = tpu.matmul %114, %112, %cst_60 {dimension_numbers = #tpu.dot_dimension_numbers<[1], [0], [0], [1], [0, 0, 1, 1], [], []>} : vector<32x16xf32>, vector<16x128xf32>, vector<32x128xf32> -> vector<32x128xf32>
    %c1_61 = arith.constant 1 : index
    %c0_62 = arith.constant 0 : index
    %c0_63 = arith.constant 0 : index
    %116 = vector.load %arg5[%c1_61, %c0_62, %c0_63] : memref<2x32x1xf32, #tpu.memory_space<vmem>>, vector<1x32x1xf32>
    %117 = vector.shape_cast %116 : vector<1x32x1xf32> to vector<32x1xf32>
    %118 = vector.broadcast %117 : vector<32x1xf32> to vector<32x128xf32>
    %119 = arith.addf %115, %118 : vector<32x128xf32>
    %cst_64 = arith.constant 0.000000e+00 : f32
    %120 = vector.broadcast %cst_64 : f32 to vector<32x128xf32>
    %121 = arith.maximumf %119, %120 : vector<32x128xf32>
    %c1_65 = arith.constant 1 : index
    %c0_66 = arith.constant 0 : index
    %c0_67 = arith.constant 0 : index
    %122 = vector.load %arg6[%c1_65, %c0_66, %c0_67] : memref<2x16x32xf32, #tpu.memory_space<vmem>>, vector<1x16x32xf32>
    %123 = vector.shape_cast %122 : vector<1x16x32xf32> to vector<16x32xf32>
    %cst_68 = arith.constant dense<0.000000e+00> : vector<16x128xf32>
    %124 = tpu.matmul %123, %121, %cst_68 {dimension_numbers = #tpu.dot_dimension_numbers<[1], [0], [0], [1], [0, 0, 1, 1], [], []>} : vector<16x32xf32>, vector<32x128xf32>, vector<16x128xf32> -> vector<16x128xf32>
    %125 = vector.broadcast %86 : vector<16x1xf32> to vector<16x128xf32>
    %126 = arith.addf %124, %125 : vector<16x128xf32>
    %127 = arith.addf %112, %126 : vector<16x128xf32>
    %cst_69 = arith.constant dense<0.000000e+00> : vector<128xf32>
    %128 = vector.multi_reduction <add>, %127, %cst_69 [0] : vector<16x128xf32> to vector<128xf32>
    %129 = vector.shape_cast %128 : vector<128xf32> to vector<1x128xf32>
    %cst_70 = arith.constant 1.600000e+01 : f32
    %130 = vector.broadcast %cst_70 : f32 to vector<1x128xf32>
    %131 = arith.divf %129, %130 : vector<1x128xf32>
    %132 = vector.broadcast %131 : vector<1x128xf32> to vector<16x128xf32>
    %133 = arith.subf %127, %132 : vector<16x128xf32>
    %134 = arith.mulf %133, %133 : vector<16x128xf32>
    %cst_71 = arith.constant dense<0.000000e+00> : vector<128xf32>
    %135 = vector.multi_reduction <add>, %134, %cst_71 [0] : vector<16x128xf32> to vector<128xf32>
    %136 = vector.shape_cast %135 : vector<128xf32> to vector<1x128xf32>
    %cst_72 = arith.constant 1.600000e+01 : f32
    %137 = vector.broadcast %cst_72 : f32 to vector<1x128xf32>
    %138 = arith.divf %136, %137 : vector<1x128xf32>
    %139 = vector.broadcast %131 : vector<1x128xf32> to vector<16x128xf32>
    %140 = arith.subf %127, %139 : vector<16x128xf32>
    %cst_73 = arith.constant 9.99999974E-6 : f32
    %141 = vector.broadcast %cst_73 : f32 to vector<1x128xf32>
    %142 = arith.addf %138, %141 : vector<1x128xf32>
    %143 = math.rsqrt %142 : vector<1x128xf32>
    %144 = vector.broadcast %143 : vector<1x128xf32> to vector<16x128xf32>
    %145 = arith.mulf %140, %144 : vector<16x128xf32>
    %146 = vector.broadcast %88 : vector<16x1xf32> to vector<16x128xf32>
    %147 = arith.mulf %145, %146 : vector<16x128xf32>
    %148 = vector.broadcast %90 : vector<16x1xf32> to vector<16x128xf32>
    %149 = arith.addf %147, %148 : vector<16x128xf32>
    %c1_74 = arith.constant 1 : index
    %c0_75 = arith.constant 0 : index
    %c0_76 = arith.constant 0 : index
    %150 = vector.load %arg8[%c1_74, %c0_75, %c0_76] : memref<2x4x16xf32, #tpu.memory_space<vmem>>, vector<1x4x16xf32>
    %151 = vector.shape_cast %150 : vector<1x4x16xf32> to vector<4x16xf32>
    %cst_77 = arith.constant dense<0.000000e+00> : vector<4x128xf32>
    %152 = tpu.matmul %151, %149, %cst_77 {dimension_numbers = #tpu.dot_dimension_numbers<[1], [0], [0], [1], [0, 0, 1, 1], [], []>} : vector<4x16xf32>, vector<16x128xf32>, vector<4x128xf32> -> vector<4x128xf32>
    %153 = arith.addf %79, %152 : vector<4x128xf32>
    %c0_78 = arith.constant 0 : index
    %c0_79 = arith.constant 0 : index
    %154 = vector.load %arg9[%c0_78, %c0_79] : memref<4x1xf32, #tpu.memory_space<vmem>>, vector<4x1xf32>
    %155 = vector.broadcast %154 : vector<4x1xf32> to vector<4x128xf32>
    %156 = arith.addf %153, %155 : vector<4x128xf32>
    %c0_80 = arith.constant 0 : index
    %c0_81 = arith.constant 0 : index
    %157 = vector.load %arg10[%c0_80, %c0_81] : memref<4x128xf32, #tpu.memory_space<vmem>>, vector<4x128xf32>
    tpu.vector_store %arg10[%c0_80, %c0_81], %156 {strides = array<i32>} : memref<4x128xf32, #tpu.memory_space<vmem>>, vector<4x128xf32>,
    return
  }
  func.func @transform_0(%arg0: i32) -> (i32, i32) {
    %c0_i32 = arith.constant 0 : i32
    %c0_i32_0 = arith.constant 0 : i32
    return %arg0, %c0_i32 : i32, i32
  }
  func.func @transform_1(%arg0: i32) -> (i32, i32) {
    %c0_i32 = arith.constant 0 : i32
    %c0_i32_0 = arith.constant 0 : i32
    %c0_i32_1 = arith.constant 0 : i32
    return %c0_i32, %c0_i32_0 : i32, i32
  }
  func.func @transform_2(%arg0: i32) -> (i32, i32) {
    %c0_i32 = arith.constant 0 : i32
    %c0_i32_0 = arith.constant 0 : i32
    %c0_i32_1 = arith.constant 0 : i32
    return %c0_i32, %c0_i32_0 : i32, i32
  }
  func.func @transform_3(%arg0: i32) -> (i32, i32, i32) {
    %c0_i32 = arith.constant 0 : i32
    %c0_i32_0 = arith.constant 0 : i32
    %c0_i32_1 = arith.constant 0 : i32
    %c0_i32_2 = arith.constant 0 : i32
    return %c0_i32, %c0_i32_0, %c0_i32_1 : i32, i32, i32
  }
  func.func @transform_4(%arg0: i32) -> (i32, i32, i32) {
    %c0_i32 = arith.constant 0 : i32
    %c0_i32_0 = arith.constant 0 : i32
    %c0_i32_1 = arith.constant 0 : i32
    %c0_i32_2 = arith.constant 0 : i32
    return %c0_i32, %c0_i32_0, %c0_i32_1 : i32, i32, i32
  }
  func.func @transform_5(%arg0: i32) -> (i32, i32, i32) {
    %c0_i32 = arith.constant 0 : i32
    %c0_i32_0 = arith.constant 0 : i32
    %c0_i32_1 = arith.constant 0 : i32
    %c0_i32_2 = arith.constant 0 : i32
    return %c0_i32, %c0_i32_0, %c0_i32_1 : i32, i32, i32
  }
  func.func @transform_6(%arg0: i32) -> (i32, i32, i32) {
    %c0_i32 = arith.constant 0 : i32
    %c0_i32_0 = arith.constant 0 : i32
    %c0_i32_1 = arith.constant 0 : i32
    %c0_i32_2 = arith.constant 0 : i32
    return %c0_i32, %c0_i32_0, %c0_i32_1 : i32, i32, i32
  }
  func.func @transform_7(%arg0: i32) -> (i32, i32, i32) {
    %c0_i32 = arith.constant 0 : i32
    %c0_i32_0 = arith.constant 0 : i32
    %c0_i32_1 = arith.constant 0 : i32
    %c0_i32_2 = arith.constant 0 : i32
    return %c0_i32, %c0_i32_0, %c0_i32_1 : i32, i32, i32
  }
  func.func @transform_8(%arg0: i32) -> (i32, i32) {
    %c0_i32 = arith.constant 0 : i32
    %c0_i32_0 = arith.constant 0 : i32
    %c0_i32_1 = arith.constant 0 : i32
    return %c0_i32, %c0_i32_0 : i32, i32
  }
  func.func @transform_9(%arg0: i32) -> (i32, i32) {
    %c0_i32 = arith.constant 0 : i32
    %c0_i32_0 = arith.constant 0 : i32
    return %c0_i32, %arg0 : i32, i32
  }
}

</mosaic_0001>

<bundles_post_ra>
// kernel: tpu_custom_call.1
= control target key start
LH: loop header
LB: loop body
LE: loop exit
PB: predicated region body
PF: predicated region fallthrough
CT: control target
= control target key end

     0   :  { %vm77_vm0 = vcmask 130048   ;;  %v1311_v2 = vmov 0   ;;  %s1644_s0 = inlined_call_operand.vmem [shape: f32[128,16], index: 0, kind: input, shape index: {}]   ;;  %s1645_s1 = inlined_call_operand.vmem [shape: f32[32,16], index: 1, kind: input, shape index: {}]   ;;  %s1646_s2 = inlined_call_operand.vmem [shape: f32[32,1], index: 2, kind: input, shape index: {}]   ;;  %s1647_s3 = inlined_call_operand.vmem [shape: f32[2,32,16], index: 3, kind: input, shape index: {}]   ;;  %s1648_s4 = inlined_call_operand.vmem [shape: f32[2,32,1], index: 4, kind: input, shape index: {}]   ;;  %s1649_s5 = inlined_call_operand.vmem [shape: f32[2,16,32], index: 5, kind: input, shape index: {}]   ;;  %s1650_s6 = inlined_call_operand.vmem [shape: f32[10,16,1], index: 6, kind: input, shape index: {}]   ;;  %s1651_s7 = inlined_call_operand.vmem [shape: f32[2,4,16], index: 7, kind: input, shape index: {}]   ;;  %s1652_s8 = inlined_call_operand.vmem [shape: f32[4,1], index: 8, kind: input, shape index: {}]   ;;  %s1653_s9 = inlined_call_operand.hbm [shape: f32[4,128], index: 9, kind: output, shape index: {}]  }
   0x1   :  { %v48_v0 = vld [vmem:[%s1644_s0 + $0x78] sm:$0xff]  ;;  %v47_v1 = vld [vmem:[%s1644_s0 + $0x70] sm:$0xff]  ;;  %1279 = vset.pattern.permute.xlu0 %v1311_v2  ;;  %1280 = vset.pattern.permute.xlu1 %v1311_v2  ;;  %v46_v3 = vld [vmem:[%s1644_s0 + $0x68] sm:$0xff] }
   0x2   :  { %1181 = vmatprep.subr.msk.mxu0 %vm77_vm0, %v48_v0  ;;  %v49_v4 = vld [vmem:[%s1645_s1] sm:$0xff]  ;;  %v54_v7 = vld [vmem:[%s1646_s2 + $0x8] sm:$0xff]  ;;  %v44_v9 = vld [vmem:[%s1644_s0 + $0x58] sm:$0xff] }
   0x3   :  { %1182 = vmatpush3.xpose.msk.msra.mxu0 %vm77_vm0, %v48_v0  ;;  %1213 = vmatprep.mubr.msk.f32.mxu0 %vm77_vm0, %v49_v4  ;;  %v53_v5 = vld [vmem:[%s1646_s2] sm:$0xff]  ;;  %v224_v8 = vld [vmem:[%s1650_s6 + $0x8] sm:$0xff]  ;;  %v43_v12 = vld [vmem:[%s1644_s0 + $0x50] sm:$0xff] }
   0x4   :  { %1183 = vmatprep.subr.msk.mxu0 %vm77_vm0, %v47_v1  ;;  %59 = vperm.xlu0 %1279, %v53_v5   ;;  %v45_v6 = vld [vmem:[%s1644_s0 + $0x60] sm:$0xff]  ;;  %v1089_v10 = vld [vmem:[%s1650_s6 + $0x28] sm:$0xff]  ;;  %v55_v13 = vld [vmem:[%s1646_s2 + $0x10] sm:$0xff] }
   0x5   :  { %269 = vperm.xlu1 %1280, %v224_v8   ;;  %v223_v11 = vld [vmem:[%s1650_s6] sm:$0xff] }
   0x6   :  { %v1088_v14 = vld [vmem:[%s1650_s6 + $0x20] sm:$0xff] }
   0x7   :  { %1184 = vmatpush3.xpose.msk.msra.mxu0 %vm77_vm0, %v47_v1 }
   0x8   :  { %1185 = vmatprep.subr.msk.mxu0 %vm77_vm0, %v46_v3  ;;  %64 = vperm.xlu0 %1279, %v54_v7  }
   0x9   :  { %264 = vperm.xlu1 %1280, %v223_v11  }
   0xb   :  { %1186 = vmatpush3.xpose.msk.msra.mxu0 %vm77_vm0, %v46_v3 }
   0xc   :  { %1187 = vmatprep.subr.msk.mxu0 %vm77_vm0, %v45_v6  ;;  %281 = vperm.xlu0 %1279, %v1089_v10  }
   0xf   :  { %1188 = vmatpush3.xpose.msk.msra.mxu0 %vm77_vm0, %v45_v6 }
  0x10   :  { %1189 = vmatprep.subr.msk.mxu0 %vm77_vm0, %v44_v9 }
  0x11   :  { %14 = vsyncpa [#allocation3], 0  ;;  %69 = vperm.xlu0 %1279, %v55_v13   ;;  %v42_v15 = vld [vmem:[%s1644_s0 + $0x48] sm:$0xff]  ;;  %v293_v16 = vld [vmem:[%s1648_s4 + $0x18] sm:$0xff]  ;;  %276 = vperm.xlu1 %1280, %v1088_v14   ;;  %vm427_vm1 = vcmask 261120   ;;  %vm1313_vm2 = vmmov 0  }
  0x12   :  { %v56_v17 = vld [vmem:[%s1646_s2 + $0x18] sm:$0xff]  ;;  %v41_v18 = vld [vmem:[%s1644_s0 + $0x40] sm:$0xff]  ;;  %v291_v19 = vld [vmem:[%s1648_s4 + $0x8] sm:$0xff]  ;;  %s1314_s24 = smov [#allocation2]  }
  0x13   :  { %1190 = vmatpush3.xpose.msk.msra.mxu0 %vm77_vm0, %v44_v9  ;;  %v292_v20 = vld [vmem:[%s1648_s4 + $0x10] sm:$0xff]  ;;  %v40_v21 = vld [vmem:[%s1644_s0 + $0x38] sm:$0xff]  ;;  %v290_v23 = vld [vmem:[%s1648_s4] sm:$0xff]  ;;  %s1060_s25 = sshll.u32 %s1314_s24, 4  ;;  %s1061_s25 = int_to_ptr.vmem [resolvable:$true] %s1060_s25 }
  0x14   :  { %1191 = vmatprep.subr.msk.mxu0 %vm77_vm0, %v43_v12  ;;  %v1103_v22 = vld [vmem:[%s1650_s6 + $0x18] sm:$0xff]  ;;  %v39_v24 = vld [vmem:[%s1644_s0 + $0x30] sm:$0xff]  ;;  %v38_v27 = vld [vmem:[%s1644_s0 + $0x28] sm:$0xff]  ;;  %s1289_s26 = scalar_lea.vmem %s1061_s25, 64  ;;  %p1294_p1 = scmp.lt.s32.totalorder %s1061_s25, %s1061_s25 }
  0x15   :  { %311 = vperm.xlu0 %1279, %v293_v16   ;;  %74 = vperm.xlu1 %1280, %v56_v17   ;;  %v1105_v25 = vld [vmem:[%s1650_s6 + $0x38] sm:$0xff]  ;;  %v1102_v26 = vld [vmem:[%s1650_s6 + $0x10] sm:$0xff]  ;;  %v37_v30 = vld [vmem:[%s1644_s0 + $0x20] sm:$0xff]  ;;  %p1290_p0 = scmp.ne.s32.totalorder %s1061_s25, %s1289_s26  ;;  %p1295_p2 = scmp.lt.s32.totalorder %s1289_s26, %s1289_s26 }
  0x16   :  { %v1119_v28 = vld [vmem:[%s1648_s4 + $0x38] sm:$0xff]  ;;  %v1104_v29 = vld [vmem:[%s1650_s6 + $0x30] sm:$0xff]  ;;  %v1117_v31 = vld [vmem:[%s1648_s4 + $0x28] sm:$0xff] }
  0x17   :  { %1192 = vmatpush3.xpose.msk.msra.mxu0 %vm77_vm0, %v43_v12  ;;  %v1118_v32 = vld [vmem:[%s1648_s4 + $0x30] sm:$0xff]  ;;  %v36_v33 = vld [vmem:[%s1644_s0 + $0x18] sm:$0xff]  ;;  %v1116_v35 = vld [vmem:[%s1648_s4 + $0x20] sm:$0xff]  ;;  %p1296_p3 = por %p1295_p2, %p1294_p1 }
  0x18   :  { %1193 = vmatprep.subr.msk.mxu0 %vm77_vm0, %v42_v15  ;;  %v1106_v34 = vld [vmem:[%s1650_s6 + $0x50] sm:$0xff]  ;;  %v1090_v37 = vld [vmem:[%s1650_s6 + $0x40] sm:$0xff]  ;;  %v1107_v38 = vld [vmem:[%s1650_s6 + $0x58] sm:$0xff] }
  0x19   :  { %301 = vperm.xlu0 %1279, %v291_v19   ;;  %306 = vperm.xlu1 %1280, %v292_v20   ;;  %v35_v36 = vld [vmem:[%s1644_s0 + $0x10] sm:$0xff]  ;;  %v34_v39 = vld [vmem:[%s1644_s0 + $0x8] sm:$0xff]  ;;  %v1109_v40 = vld [vmem:[%s1650_s6 + $0x78] sm:$0xff]  ;;  %p1297_p4 = pnand %p1296_p3, %p1290_p0 }
  0x1a   :  { %v1091_v41 = vld [vmem:[%s1650_s6 + $0x48] sm:$0xff]  ;;  %v33_v42 = vld [vmem:[%s1644_s0] sm:$0xff]  ;;  %v1111_v43 = vld [vmem:[%s1650_s6 + $0x98] sm:$0xff] }
  0x1b   :  { %1194 = vmatpush3.xpose.msk.msra.mxu0 %vm77_vm0, %v42_v15  ;;  %v1108_v44 = vld [vmem:[%s1650_s6 + $0x70] sm:$0xff]  ;;  %v1093_v46 = vld [vmem:[%s1650_s6 + $0x68] sm:$0xff]  ;;  %v1092_v50 = vld [vmem:[%s1650_s6 + $0x60] sm:$0xff] }
  0x1c   :  { %1195 = vmatprep.subr.msk.mxu0 %vm77_vm0, %v41_v18  ;;  %v1110_v45 = vld [vmem:[%s1650_s6 + $0x90] sm:$0xff]  ;;  %v50_v47 = vld [vmem:[%s1645_s1 + $0x8] sm:$0xff]  ;;  %v52_v51 = vld [vmem:[%s1645_s1 + $0x18] sm:$0xff] }
  0x1d   :  { %606 = vperm.xlu0 %1279, %v1103_v22   ;;  %296 = vperm.xlu1 %1280, %v290_v23   ;;  %v51_v48 = vld [vmem:[%s1645_s1 + $0x10] sm:$0xff]  ;;  %v1095_v49 = vld [vmem:[%s1650_s6 + $0x88] sm:$0xff]  ;;  %v1046_v52 = vld [vmem:[%s1652_s8] sm:$0xf] }
  0x1e   :  { %v1094_v53 = vld [vmem:[%s1650_s6 + $0x80] sm:$0xff] }
  0x1f   :  { %1196 = vmatpush3.xpose.msk.msra.mxu0 %vm77_vm0, %v41_v18  ;;  %v286_v54 = vld [vmem:[%s1647_s3] sm:$0xff] }
  0x20   :  { %1197 = vmatprep.subr.msk.mxu0 %vm77_vm0, %v40_v21  ;;  %1223 = vmatprep.mubr.msk.f32.mxu1 %vm77_vm0, %v286_v54 }
  0x21   :  { %618 = vperm.xlu0 %1279, %v1105_v25   ;;  %601 = vperm.xlu1 %1280, %v1102_v26  }
  0x23   :  { %1198 = vmatpush3.xpose.msk.msra.mxu0 %vm77_vm0, %v40_v21 }
  0x24   :  { %1199 = vmatprep.subr.msk.mxu0 %vm77_vm0, %v39_v24 }
  0x25   :  { %650 = vperm.xlu0 %1279, %v1119_v28   ;;  %613 = vperm.xlu1 %1280, %v1104_v29   ;;  %v287_v29 = vld [vmem:[%s1647_s3 + $0x8] sm:$0xff] }
  0x27   :  { %1200 = vmatpush3.xpose.msk.msra.mxu0 %vm77_vm0, %v39_v24 }
  0x28   :  { %1201 = vmatprep.subr.msk.mxu0 %vm77_vm0, %v38_v27 }
  0x29   :  { %640 = vperm.xlu0 %1279, %v1117_v31   ;;  %645 = vperm.xlu1 %1280, %v1118_v32   ;;  %v289_v31 = vld [vmem:[%s1647_s3 + $0x18] sm:$0xff]  ;;  %v415_v32 = vld [vmem:[%s1649_s5] sm:$0xff] }
  0x2b   :  { %1202 = vmatpush3.xpose.msk.msra.mxu0 %vm77_vm0, %v38_v27 }
  0x2c   :  { %1203 = vmatprep.subr.msk.mxu0 %vm77_vm0, %v37_v30 }
  0x2d   :  { %759 = vperm.xlu0 %1279, %v1106_v34   ;;  %635 = vperm.xlu1 %1280, %v1116_v35  }
  0x2f   :  { %1204 = vmatpush3.xpose.msk.msra.mxu0 %vm77_vm0, %v37_v30  ;;  %v288_v30 = vld [vmem:[%s1647_s3 + $0x10] sm:$0xff] }
  0x30   :  { %1205 = vmatprep.subr.msk.mxu0 %vm77_vm0, %v36_v33 }
  0x31   :  { %419 = vperm.xlu0 %1279, %v1090_v37   ;;  %764 = vperm.xlu1 %1280, %v1107_v38  }
  0x33   :  { %1206 = vmatpush3.xpose.msk.msra.mxu0 %vm77_vm0, %v36_v33 }
  0x34   :  { %1207 = vmatprep.subr.msk.mxu0 %vm77_vm0, %v35_v36 }
  0x35   :  { %881 = vperm.xlu0 %1279, %v1109_v40   ;;  %424 = vperm.xlu1 %1280, %v1091_v41  }
  0x37   :  { %1208 = vmatpush3.xpose.msk.msra.mxu0 %vm77_vm0, %v35_v36 }
  0x38   :  { %1209 = vmatprep.subr.msk.mxu0 %vm77_vm0, %v34_v39 }
  0x39   :  { %893 = vperm.xlu0 %1279, %v1111_v43   ;;  %876 = vperm.xlu1 %1280, %v1108_v44  }
  0x3b   :  { %1210 = vmatpush3.xpose.msk.msra.mxu0 %vm77_vm0, %v34_v39 }
  0x3c   :  { %1211 = vmatprep.subr.msk.mxu0 %vm77_vm0, %v33_v42 }
  0x3d   :  { %888 = vperm.xlu0 %1279, %v1110_v45   ;;  %542 = vperm.xlu1 %1280, %v1093_v46  }
  0x3f   :  { %1212 = vmatpush3.xpose.msk.msra.mxu0 %vm77_vm0, %v33_v42 }
  0x41   :  { %554 = vperm.xlu0 %1279, %v1095_v49   ;;  %537 = vperm.xlu1 %1280, %v1092_v50  }
  0x42   :  { %1214 = vmatmul.mubr.msk.f32.vlgmr.msra.gmra.mxu0 %vm77_vm0, %v50_v47 }
  0x43   :  { %1216 = vmatprep.mubr.msk.f32.mxu0 %vm77_vm0, %v51_v48 }
  0x45   :  { %1049 = vperm.xlu0 %1279, %v1046_v52   ;;  %549 = vperm.xlu1 %1280, %v1094_v53  }
  0x46   :  { %1217 = vmatmul.mubr.msk.f32.gmra.mxu0 %vm77_vm0, %v52_v51 }
  0x7f   :  { %v60_v55 = vpop.permute.xlu0 %59 }
  0x80   :  { %v270_v18 = vpop.permute.xlu1 %269 }
  0x83   :  { %v65_v57 = vpop.permute.xlu0 %64 }
  0x84   :  { %v265_v20 = vpop.permute.xlu1 %264 }
  0x87   :  { %v282_v25 = vpop.permute.xlu0 %281 }
  0x8c   :  { %v277_v27 = vpop.permute.xlu1 %276  ;;  %v70_v36 = vpop.permute.xlu0 %69 }
  0x90   :  { %v75_v34 = vpop.permute.xlu1 %74 }
 0x102   :  { %v1215_v56 = vpop.f32.mrf.mxu0 }
 0x103   :  { %v210_v59 = vadd.f32 %v1215_v56, %v65_v57 }
 0x104   :  { %v204_v58 = vpop.f32.mrf.mxu0 }
 0x105   :  { %v205_v60 = vadd.f32 %v204_v58, %v60_v55 }
 0x106   :  { %v1218_v33 = vpop.f32.mrf.mxu0 }
 0x107   :  { %v237_v61 = vadd.f32 %v210_v59, %v205_v60  ;;  %v220_v37 = vadd.f32 %v1218_v33, %v75_v34 }
 0x108   :  { %v214_v35 = vpop.f32.mrf.mxu0 }
 0x109   :  { %v238_v62 = vrot.slane %v237_v61, 4  ;;  %v215_v38 = vadd.f32 %v214_v35, %v70_v36 }
 0x10b   :  { %v239_v63 = vadd.f32 %v238_v62, %v237_v61  ;;  %v575_v39 = vadd.f32 %v220_v37, %v215_v38  ;;  %v307_v61 = vpop.permute.xlu1 %306 }
 0x10d   :  { %v240_v0 = vrot.slane %v239_v63, 2  ;;  %v576_v40 = vrot.slane %v575_v39, 4 }
 0x10f   :  { %v241_v1 = vadd.f32 %v240_v0, %v239_v63  ;;  %v577_v41 = vadd.f32 %v576_v40, %v575_v39 }
 0x111   :  { %v242_v2 = vrot.slane %v241_v1, 1  ;;  %v578_v42 = vrot.slane %v577_v41, 2 }
 0x113   :  { %v243_v3 = vadd.f32 %v242_v2, %v241_v1  ;;  %v579_v43 = vadd.f32 %v578_v42, %v577_v41  ;;  %v297_v2 = vpop.permute.xlu1 %296 }
 0x115   :  { %v245_v4 = vmul.f32 0.0625, %v243_v3  ;;  %v580_v44 = vrot.slane %v579_v43, 1 }
 0x117   :  { %v246_v5 = vsub.f32 %v205_v60, %v245_v4  ;;  %v247_v6 = vsub.f32 %v210_v59, %v245_v4  ;;  %v581_v45 = vadd.f32 %v580_v44, %v579_v43  ;;  %v312_v60 = vpop.permute.xlu0 %311 }
 0x119   :  { %v248_v7 = vmul.f32 %v246_v5, %v246_v5  ;;  %v249_v8 = vmul.f32 %v247_v6, %v247_v6  ;;  %v582_v46 = vmul.f32 0.0625, %v581_v45 }
 0x11b   :  { %v250_v9 = vadd.f32 %v249_v8, %v248_v7  ;;  %v583_v47 = vsub.f32 %v215_v38, %v582_v46  ;;  %v584_v48 = vsub.f32 %v220_v37, %v582_v46  ;;  %v302_v63 = vpop.permute.xlu0 %301 }
 0x11d   :  { %v251_v10 = vrot.slane %v250_v9, 4  ;;  %v585_v49 = vmul.f32 %v583_v47, %v583_v47  ;;  %v586_v50 = vmul.f32 %v584_v48, %v584_v48 }
 0x11f   :  { %v252_v11 = vadd.f32 %v251_v10, %v250_v9  ;;  %v587_v51 = vadd.f32 %v586_v50, %v585_v49  ;;  %v607_v10 = vpop.permute.xlu0 %606 }
 0x121   :  { %v253_v12 = vrot.slane %v252_v11, 2  ;;  %v588_v52 = vrot.slane %v587_v51, 4 }
 0x123   :  { %v254_v13 = vadd.f32 %v253_v12, %v252_v11  ;;  %v589_v53 = vadd.f32 %v588_v52, %v587_v51 }
 0x125   :  { %v255_v14 = vrot.slane %v254_v13, 1  ;;  %v590_v54 = vrot.slane %v589_v53, 2 }
 0x127   :  { %v256_v15 = vadd.f32 %v255_v14, %v254_v13  ;;  %v591_v55 = vadd.f32 %v590_v54, %v589_v53  ;;  %v602_v14 = vpop.permute.xlu1 %601 }
 0x129   :  { %v257_v16 = vmul.f32 0.0625, %v256_v15  ;;  %v592_v56 = vrot.slane %v591_v55, 1 }
 0x12b   :  { %v258_v17 = vadd.f32 1e-05, %v257_v16  ;;  %v593_v57 = vadd.f32 %v592_v56, %v591_v55 }
 0x12d   :  { %1281 = vrsqrt.f32 %v258_v17  ;;  %v594_v58 = vmul.f32 0.0625, %v593_v57 }
 0x12f   :  { %v595_v59 = vadd.f32 1e-05, %v594_v58 }
 0x131   :  { %1283 = vrsqrt.f32 %v595_v59 }
 0x13a   :  { %v1282_v19 = vpop.eup %1281 }
 0x13b   :  { %v260_v21 = vmul.f32 %v1282_v19, %v246_v5  ;;  %v261_v22 = vmul.f32 %v1282_v19, %v247_v6  ;;  %v619_v19 = vpop.permute.xlu0 %618 }
 0x13d   :  { %v273_v23 = vmul.f32 %v270_v18, %v261_v22  ;;  %v272_v24 = vmul.f32 %v265_v20, %v260_v21  ;;  %v416_v20 = vld [vmem:[%s1649_s5 + $0x8] sm:$0xff]  ;;  %v1112_v22 = vld [vmem:[%s1647_s3 + $0x20] sm:$0xff] }
 0x13e   :  { %v1284_v1 = vpop.eup %1283 }
 0x13f   :  { %v1564_v26 = vadd.f32 %v282_v25, %v273_v23  ;;  %v1567_v28 = vadd.f32 %v277_v27, %v272_v24  ;;  %v598_v9 = vmul.f32 %v1284_v1, %v584_v48  ;;  %v597_v11 = vmul.f32 %v1284_v1, %v583_v47  ;;  %v614_v23 = vpop.permute.xlu1 %613  ;;  %v1113_v25 = vld [vmem:[%s1647_s3 + $0x28] sm:$0xff]  ;;  %v1114_v27 = vld [vmem:[%s1647_s3 + $0x30] sm:$0xff] }
 0x141   :  { %1219 = vmatprep.subr.mxu1 %v1564_v26  ;;  %v610_v16 = vmul.f32 %v607_v10, %v598_v9  ;;  %v609_v17 = vmul.f32 %v602_v14, %v597_v11 }
 0x142   :  { %1220 = vmatpush3.msra.mxu1 %v1564_v26 }
 0x143   :  { %1221 = vmatprep.subr.mxu1 %v1567_v28  ;;  %v1591_v21 = vadd.f32 %v619_v19, %v610_v16  ;;  %v1596_v24 = vadd.f32 %v614_v23, %v609_v17  ;;  %v1312_v16 = vmov 0.0  }
 0x144   :  { %1222 = vmatpush3.msra.mxu1 %v1567_v28 }
 0x145   :  { %1224 = vmatmul.mubr.msk.f32.vlgmr.msra.gmra.mxu1 %vm77_vm0, %v287_v29  ;;  %v1115_v29 = vld [vmem:[%s1647_s3 + $0x38] sm:$0xff] }
 0x146   :  { %1226 = vmatprep.mubr.msk.f32.mxu1 %vm77_vm0, %v288_v30  ;;  %v1124_v30 = vld [vmem:[%s1649_s5 + $0x10] sm:$0xff] }
 0x149   :  { %1227 = vmatmul.mubr.msk.f32.gmra.mxu1 %vm77_vm0, %v289_v31  ;;  %v646_v31 = vpop.permute.xlu1 %645 }
 0x14a   :  { %1237 = vmatprep.mubr.msk.f32.mxu1 %vm427_vm1, %v415_v32  ;;  %v651_v32 = vpop.permute.xlu0 %650 }
 0x14d   :  { %v636_v33 = vpop.permute.xlu1 %635 }
 0x14e   :  { %v641_v34 = vpop.permute.xlu0 %640 }
 0x151   :  { %v765_v35 = vpop.permute.xlu1 %764 }
 0x152   :  { %v1620_v36 = vpop.permute.xlu0 %759 }
 0x155   :  { %v425_v37 = vpop.permute.xlu1 %424 }
 0x156   :  { %v420_v40 = vpop.permute.xlu0 %419 }
 0x205   :  { %v1225_v62 = vpop.f32.mrf.mxu1 }
 0x206   :  { %v398_v6 = vadd.f32 %v1225_v62, %v302_v63 }
 0x207   :  { %v392_v0 = vpop.f32.mrf.mxu1 }
 0x208   :  { %v393_v12 = vadd.f32 %v392_v0, %v297_v2  ;;  %v412_v15 = vmax.f32 %v398_v6, 0.0 }
 0x209   :  { %v1228_v3 = vpop.f32.mrf.mxu1 }
 0x20a   :  { %v408_v4 = vadd.f32 %v1228_v3, %v312_v60  ;;  %v411_v18 = vmax.f32 %v393_v12, 0.0 }
 0x20b   :  { %v402_v5 = vpop.f32.mrf.mxu1 }
 0x20c   :  { %v414_v7 = vmax.f32 %v408_v4, 0.0  ;;  %v403_v8 = vadd.f32 %v402_v5, %v307_v61  ;;  %v1125_v61 = vld [vmem:[%s1649_s5 + $0x18] sm:$0xff] }
 0x20e   :  { %v413_v13 = vmax.f32 %v403_v8, 0.0  ;;  %1229 = vmatprep.subr.mxu1 %v414_v7 }
 0x20f   :  { %1230 = vmatpush3.msra.mxu1 %v414_v7 }
 0x210   :  { %1231 = vmatprep.subr.mxu1 %v413_v13 }
 0x211   :  { %1232 = vmatpush3.msra.mxu1 %v413_v13 }
 0x212   :  { %1233 = vmatprep.subr.mxu1 %v412_v15 }
 0x213   :  { %1234 = vmatpush3.msra.mxu1 %v412_v15 }
 0x214   :  { %1235 = vmatprep.subr.mxu1 %v411_v18 }
 0x215   :  { %1236 = vmatpush3.msra.mxu1 %v411_v18 }
 0x216   :  { %1238 = vmatmul.mubr.msk.f32.vlgmr.msra.gmra.mxu1 %vm427_vm1, %v416_v20  ;;  %1240 = vmatprep.subr.mxu1 %v1591_v21 }
 0x217   :  { %1241 = vmatpush3.msra.mxu1 %v1591_v21  ;;  %1244 = vmatprep.mubr.msk.f32.mxu1 %vm77_vm0, %v1112_v22 }
 0x218   :  { %1242 = vmatprep.subr.mxu1 %v1596_v24 }
 0x219   :  { %1243 = vmatpush3.msra.mxu1 %v1596_v24 }
 0x21a   :  { %1245 = vmatmul.mubr.msk.f32.vlgmr.msra.gmra.mxu1 %vm77_vm0, %v1113_v25 }
 0x21b   :  { %1247 = vmatprep.mubr.msk.f32.mxu1 %vm77_vm0, %v1114_v27 }
 0x21e   :  { %1248 = vmatmul.mubr.msk.f32.gmra.mxu1 %vm77_vm0, %v1115_v29 }
 0x21f   :  { %1258 = vmatprep.mubr.msk.f32.mxu1 %vm427_vm1, %v1124_v30 }
 0x2d6   :  { %v1239_v38 = vpop.f32.mrf.mxu1 }
 0x2d7   :  { %v506_v39 = vadd.f32 %v1239_v38, %v425_v37 }
 0x2d8   :  { %v500_v41 = vpop.f32.mrf.mxu1 }
 0x2d9   :  { %v501_v42 = vadd.f32 %v500_v41, %v420_v40  ;;  %v510_v44 = vadd.f32 %v506_v39, %v1564_v26 }
 0x2da   :  { %v1246_v43 = vpop.f32.mrf.mxu1 }
 0x2db   :  { %v509_v45 = vadd.f32 %v501_v42, %v1567_v28  ;;  %v737_v53 = vadd.f32 %v1246_v43, %v641_v34 }
 0x2dc   :  { %v731_v46 = vpop.f32.mrf.mxu1 }
 0x2dd   :  { %v511_v47 = vadd.f32 %v510_v44, %v509_v45  ;;  %v732_v57 = vadd.f32 %v731_v46, %v636_v33  ;;  %v751_v60 = vmax.f32 %v737_v53, 0.0  ;;  %v882_v46 = vpop.permute.xlu0 %881 }
 0x2de   :  { %v1249_v48 = vpop.f32.mrf.mxu1 }
 0x2df   :  { %v512_v49 = vrot.slane %v511_v47, 4  ;;  %v747_v50 = vadd.f32 %v1249_v48, %v651_v32  ;;  %v750_v28 = vmax.f32 %v732_v57, 0.0 }
 0x2e0   :  { %v741_v51 = vpop.f32.mrf.mxu1 }
 0x2e1   :  { %v513_v52 = vadd.f32 %v512_v49, %v511_v47  ;;  %v753_v54 = vmax.f32 %v747_v50, 0.0  ;;  %v742_v55 = vadd.f32 %v741_v51, %v646_v31  ;;  %v877_v47 = vpop.permute.xlu1 %876  ;;  %v894_v48 = vpop.permute.xlu0 %893 }
 0x2e3   :  { %v514_v56 = vrot.slane %v513_v52, 2  ;;  %v752_v58 = vmax.f32 %v742_v55, 0.0  ;;  %1250 = vmatprep.subr.mxu1 %v753_v54 }
 0x2e4   :  { %1251 = vmatpush3.msra.mxu1 %v753_v54 }
 0x2e5   :  { %v515_v59 = vadd.f32 %v514_v56, %v513_v52  ;;  %1252 = vmatprep.subr.mxu1 %v752_v58  ;;  %v543_v49 = vpop.permute.xlu1 %542  ;;  %v889_v53 = vpop.permute.xlu0 %888 }
 0x2e6   :  { %1253 = vmatpush3.msra.mxu1 %v752_v58 }
 0x2e7   :  { %v516_v26 = vrot.slane %v515_v59, 1  ;;  %1254 = vmatprep.subr.mxu1 %v751_v60 }
 0x2e8   :  { %1255 = vmatpush3.msra.mxu1 %v751_v60 }
 0x2e9   :  { %v517_v62 = vadd.f32 %v516_v26, %v515_v59  ;;  %1256 = vmatprep.subr.mxu1 %v750_v28  ;;  %v538_v56 = vpop.permute.xlu1 %537  ;;  %v1128_v26 = vld [vmem:[%s1651_s7 + $0x4] sm:$0xf] }
 0x2ea   :  { %1257 = vmatpush3.msra.mxu1 %v750_v28  ;;  %v555_v28 = vpop.permute.xlu0 %554 }
 0x2eb   :  { %v518_v63 = vmul.f32 0.0625, %v517_v62  ;;  %1259 = vmatmul.mubr.msk.f32.vlgmr.msra.gmra.mxu1 %vm427_vm1, %v1125_v61  ;;  %1261 = vmatprep.subr.mxu1 %v1312_v16 }
 0x2ec   :  { %1265 = vmatprep.mubr.msk.f32.mxu1 %vm1313_vm2, %v1312_v16 }
 0x2ed   :  { %v519_v0 = vsub.f32 %v509_v45, %v518_v63  ;;  %v520_v1 = vsub.f32 %v510_v44, %v518_v63  ;;  %v550_v62 = vpop.permute.xlu1 %549 }
 0x2ef   :  { %v521_v2 = vmul.f32 %v519_v0, %v519_v0  ;;  %v522_v3 = vmul.f32 %v520_v1, %v520_v1 }
 0x2f1   :  { %v523_v4 = vadd.f32 %v522_v3, %v521_v2 }
 0x2f3   :  { %v524_v5 = vrot.slane %v523_v4, 4 }
 0x2f5   :  { %v525_v6 = vadd.f32 %v524_v5, %v523_v4  ;;  %v1050_v5 = vpop.permute.xlu0 %1049 }
 0x2f7   :  { %v526_v7 = vrot.slane %v525_v6, 2 }
 0x2f9   :  { %v527_v8 = vadd.f32 %v526_v7, %v525_v6 }
 0x2fb   :  { %v528_v9 = vrot.slane %v527_v8, 1 }
 0x2fd   :  { %v529_v10 = vadd.f32 %v528_v9, %v527_v8 }
 0x2ff   :  { %v530_v11 = vmul.f32 0.0625, %v529_v10 }
 0x301   :  { %v531_v12 = vadd.f32 1e-05, %v530_v11 }
 0x303   :  { %1285 = vrsqrt.f32 %v531_v12 }
 0x310   :  { %v1286_v13 = vpop.eup %1285 }
 0x311   :  { %v533_v14 = vmul.f32 %v1286_v13, %v519_v0  ;;  %v534_v15 = vmul.f32 %v1286_v13, %v520_v1  ;;  %v559_v0 = vld [vmem:[%s1651_s7] sm:$0xf] }
 0x313   :  { %v546_v58 = vmul.f32 %v543_v49, %v534_v15  ;;  %v545_v59 = vmul.f32 %v538_v56, %v533_v14 }
 0x315   :  { %v558_v61 = vadd.f32 %v555_v28, %v546_v58  ;;  %v557_v63 = vadd.f32 %v550_v62, %v545_v59 }
 0x3ab   :  { %v1260_v17 = vpop.f32.mrf.mxu1 }
 0x3ac   :  { %v845_v18 = vadd.f32 %v1260_v17, %v765_v35 }
 0x3ad   :  { %v839_v19 = vpop.f32.mrf.mxu1 }
 0x3ae   :  { %v840_v20 = vadd.f32 %v839_v19, %v1620_v36  ;;  %v849_v22 = vadd.f32 %v845_v18, %v1591_v21 }
 0x3b0   :  { %v848_v23 = vadd.f32 %v840_v20, %v1596_v24 }
 0x3b2   :  { %v850_v25 = vadd.f32 %v849_v22, %v848_v23 }
 0x3b4   :  { %v851_v27 = vrot.slane %v850_v25, 4 }
 0x3b6   :  { %v852_v29 = vadd.f32 %v851_v27, %v850_v25 }
 0x3b8   :  { %v853_v30 = vrot.slane %v852_v29, 2 }
 0x3ba   :  { %v854_v31 = vadd.f32 %v853_v30, %v852_v29 }
 0x3bc   :  { %v855_v32 = vrot.slane %v854_v31, 1 }
 0x3be   :  { %v856_v33 = vadd.f32 %v855_v32, %v854_v31 }
 0x3c0   :  { %v857_v34 = vmul.f32 0.0625, %v856_v33 }
 0x3c2   :  { %v858_v37 = vsub.f32 %v848_v23, %v857_v34  ;;  %v859_v38 = vsub.f32 %v849_v22, %v857_v34 }
 0x3c4   :  { %v860_v39 = vmul.f32 %v858_v37, %v858_v37  ;;  %v861_v40 = vmul.f32 %v859_v38, %v859_v38 }
 0x3c6   :  { %v862_v35 = vadd.f32 %v861_v40, %v860_v39 }
 0x3c8   :  { %v863_v41 = vrot.slane %v862_v35, 4 }
 0x3ca   :  { %v864_v42 = vadd.f32 %v863_v41, %v862_v35 }
 0x3cc   :  { %v865_v36 = vrot.slane %v864_v42, 2 }
 0x3ce   :  { %v866_v43 = vadd.f32 %v865_v36, %v864_v42 }
 0x3d0   :  { %v867_v21 = vrot.slane %v866_v43, 1 }
 0x3d2   :  { %v868_v44 = vadd.f32 %v867_v21, %v866_v43 }
 0x3d4   :  { %v869_v24 = vmul.f32 0.0625, %v868_v44 }
 0x3d6   :  { %v870_v45 = vadd.f32 1e-05, %v869_v24 }
 0x3d8   :  { %1287 = vrsqrt.f32 %v870_v45 }
 0x3e5   :  { %v1288_v50 = vpop.eup %1287 }
 0x3e6   :  { %v872_v51 = vmul.f32 %v1288_v50, %v858_v37  ;;  %v873_v52 = vmul.f32 %v1288_v50, %v859_v38 }
 0x3e8   :  { %v884_v54 = vmul.f32 %v877_v47, %v872_v51  ;;  %v885_v55 = vmul.f32 %v882_v46, %v873_v52 }
 0x3ea   :  { %v897_v57 = vadd.f32 %v894_v48, %v885_v55  ;;  %v896_v60 = vadd.f32 %v889_v53, %v884_v54 }
 0x3ec   :  { %1262 = vmatpush3.msra.mxu1 %v897_v57 }
 0x3ed   :  { %1263 = vmatprep.subr.mxu1 %v1312_v16 }
 0x3ee   :  { %1264 = vmatpush3.msra.mxu1 %v896_v60 }
 0x3ef   :  { %1266 = vmatmul.mubr.msk.f32.vlgmr.msra.gmra.mxu1 %vm77_vm0, %v1128_v26  ;;  %1268 = vmatprep.subr.mxu1 %v1312_v16 }
 0x3f0   :  { %1269 = vmatpush3.msra.mxu1 %v558_v61  ;;  %1272 = vmatprep.mubr.msk.f32.mxu1 %vm1313_vm2, %v1312_v16 }
 0x3f1   :  { %1270 = vmatprep.subr.mxu1 %v1312_v16 }
 0x3f2   :  { %1271 = vmatpush3.msra.mxu1 %v557_v63 }
 0x3f3   :  { %1273 = vmatmul.mubr.msk.f32.vlgmr.msra.gmra.mxu1 %vm77_vm0, %v559_v0 }
 0x4af   :  { %v969_v1 = vpop.f32.mrf.mxu1 }
 0x4b1   :  { %v1267_v2 = vpop.f32.mrf.mxu1 }
 0x4b3   :  { %v1042_v3 = vpop.f32.mrf.mxu1 }
 0x4b4   :  { %v1043_v4 = vadd.f32 %v1042_v3, %v969_v1 }
 0x4b5   :  { %v1274_v6 = vpop.f32.mrf.mxu1 }
 0x4b6   :  { %v1052_v7 = vadd.f32 %v1050_v5, %v1043_v4 }
 0x4b8   :  { %1053 = vst [vmem:[#allocation2] sm:$0xf] %v1052_v7 }
 0x4b9   :  { %1300 = shalt.err (!%p1297_p4)
}
 0x4ba   :  { %1063 = dma.vmem_to_hbm [thread:$0]  %s1061_s25, 64, %s1653_s9, [#allocation3]  }
 0x4bb   :  { %1309 = dma.done.wait [#allocation3], 64  }
 0x4bc   :  { %1310 = vsyncadd [#allocation3], 4294967232 }
 0x4bd   :  { %1067 = vsyncpa [#allocation3], 1 }

</bundles_post_ra>
